<compile_context>
chip_gen: v6e
topology: v6e:2x2x1
jax: 0.10.0
libtpu: 0.0.40
codegen_flags: <defaults>
</compile_context>

<pallas_src>
import jax
import jax.numpy as jnp
from jax import lax
from jax.experimental import pallas as pl
from jax.experimental.pallas import tpu as pltpu


def _bert_output_kernel(x_ref, wt_ref, b_ref, r_ref, g_ref, beta_ref,
                        o_ref, acc_ref):
    """Grid = (token_tiles, k_tiles); k (intermediate dim) is the inner axis.

    acc_ref: (tok_tile, H) f32 accumulator in VMEM scratch.
    """
    k = pl.program_id(1)

    @pl.when(k == 0)
    def _init():
        acc_ref[...] = jnp.zeros_like(acc_ref)

    # dense partial product: (tok_tile, k_tile) @ (k_tile, H), f32 accumulation.
    acc_ref[...] += jnp.dot(x_ref[...], wt_ref[...],
                            preferred_element_type=jnp.float32)

    @pl.when(k == pl.num_programs(1) - 1)
    def _finalize():
        # bias + residual (dropout is identity at inference)
        h = (acc_ref[...]
             + b_ref[...].astype(jnp.float32)
             + r_ref[...].astype(jnp.float32))
        # LayerNorm over hidden, eps = 1e-12, biased variance
        mu = jnp.mean(h, axis=-1, keepdims=True)
        var = jnp.mean((h - mu) * (h - mu), axis=-1, keepdims=True)
        h = (h - mu) * lax.rsqrt(var + 1e-12)
        h = h * g_ref[...].astype(jnp.float32) + beta_ref[...].astype(jnp.float32)
        o_ref[...] = h.astype(o_ref.dtype)


def bert_output(hidden_states, input_tensor, w, b, gamma, beta,
                *, tok_tile=None, k_tile=None):
    """hidden_states: (B, S, I); input_tensor: (B, S, H); w: (H, I) torch (out, in).

    Returns (B, S, H) in hidden_states.dtype.
    """
    B, S, I = hidden_states.shape
    H = input_tensor.shape[-1]
    T = B * S

    # Bounded tiles: keep x/W/out/residual double-buffers + f32 scratch well
    # under the default 32 MiB scoped VMEM on every generation (incl. v7x).
    if tok_tile is None:
        tok_tile = T if T <= 256 else 256
    if k_tile is None:
        k_tile = I if I <= 512 else 512
    assert T % tok_tile == 0, (T, tok_tile)
    assert I % k_tile == 0, (I, k_tile)

    x2 = hidden_states.reshape(T, I)
    r2 = input_tensor.reshape(T, H)
    wt = jnp.transpose(w)          # one-time wrapper transpose -> (I, H), lane-dense RHS
    b2 = b.reshape(1, H)
    g2 = gamma.reshape(1, H)
    beta2 = beta.reshape(1, H)

    grid = (T // tok_tile, I // k_tile)

    in_bytes = hidden_states.dtype.itemsize
    cost = pl.CostEstimate(
        flops=2 * T * I * H,
        transcendentals=0,
        bytes_accessed=(T * I * in_bytes                       # activations
                        + I * H * wt.dtype.itemsize * grid[0]  # weight re-streamed per tok tile
                        + 2 * T * H * in_bytes                 # residual + output
                        + 3 * H * 4),
    )

    out = pl.pallas_call(
        _bert_output_kernel,
        out_shape=jax.ShapeDtypeStruct((T, H), hidden_states.dtype),
        grid_spec=pltpu.PrefetchScalarGridSpec(
            num_scalar_prefetch=0,
            grid=grid,
            in_specs=[
                pl.BlockSpec((tok_tile, k_tile), lambda i, k: (i, k)),  # x
                pl.BlockSpec((k_tile, H), lambda i, k: (k, 0)),         # W^T (pre-transposed)
                pl.BlockSpec((1, H), lambda i, k: (0, 0)),              # dense bias
                pl.BlockSpec((tok_tile, H), lambda i, k: (i, 0)),       # residual
                pl.BlockSpec((1, H), lambda i, k: (0, 0)),              # LN gamma
                pl.BlockSpec((1, H), lambda i, k: (0, 0)),              # LN beta
            ],
            out_specs=pl.BlockSpec((tok_tile, H), lambda i, k: (i, 0)),
            scratch_shapes=[pltpu.VMEM((tok_tile, H), jnp.float32)],
        ),
        compiler_params=pltpu.CompilerParams(
            dimension_semantics=("parallel", "arbitrary")),
        cost_estimate=cost,
    )(x2, wt, b2, r2, g2, beta2)

    return out.reshape(B, S, H)


def _reference(hidden_states, input_tensor, w, b, gamma, beta):
    h = hidden_states @ w.T + b
    h = h + input_tensor                       # dropout = identity (eval)
    mu = jnp.mean(h, axis=-1, keepdims=True)
    var = jnp.mean((h - mu) ** 2, axis=-1, keepdims=True)
    h = (h - mu) / jnp.sqrt(var + 1e-12)
    return h * gamma + beta


if __name__ == "__main__":
    # small config: batch=2, seq=8, hidden=32, intermediate=128 (4*hidden)
    B, S, H, I = 2, 8, 32, 128
    key = jax.random.PRNGKey(0)
    kx, kr, kw, kb, kg, kbeta = jax.random.split(key, 6)

    hidden_states = jax.random.normal(kx, (B, S, I), dtype=jnp.float32)
    input_tensor = jax.random.normal(kr, (B, S, H), dtype=jnp.float32)
    w = jax.random.normal(kw, (H, I), dtype=jnp.float32) * 0.05      # dense weight (out, in)
    b = jax.random.normal(kb, (H,), dtype=jnp.float32) * 0.05        # dense bias
    gamma = 1.0 + 0.05 * jax.random.normal(kg, (H,), dtype=jnp.float32)
    beta = 0.05 * jax.random.normal(kbeta, (H,), dtype=jnp.float32)

    out = bert_output(hidden_states, input_tensor, w, b, gamma, beta)
    out = jax.block_until_ready(out)

    ref = _reference(hidden_states, input_tensor, w, b, gamma, beta)
    assert out.shape == (B, S, H)
    assert jnp.allclose(out, ref, atol=1e-4, rtol=1e-4), "mismatch vs reference"

    print("KERNEL_OK")
</pallas_src>

<mosaic_0001>
module attributes {stable_mosaic.version = 11 : i64} {
  func.func @_bert_output_kernel(%arg0: i32, %arg1: i32, %arg2: memref<16x128xf32, #tpu.memory_space<vmem>>, %arg3: memref<128x32xf32, #tpu.memory_space<vmem>>, %arg4: memref<1x32xf32, #tpu.memory_space<vmem>>, %arg5: memref<16x32xf32, #tpu.memory_space<vmem>>, %arg6: memref<1x32xf32, #tpu.memory_space<vmem>>, %arg7: memref<1x32xf32, #tpu.memory_space<vmem>>, %arg8: memref<16x32xf32, #tpu.memory_space<vmem>>, %arg9: memref<16x32xf32, #tpu.memory_space<vmem>>) attributes {dimension_semantics = [#tpu.dimension_semantics<parallel>, #tpu.dimension_semantics<arbitrary>], iteration_bounds = array<i64: 1, 1>, scalar_prefetch = 0 : i64, scratch_operands = 1 : i64, tpu.core_type = #tpu.core_type<tc>, window_params = [{transform_indices = @transform_0, window_bounds = array<i64: 16, 128>}, {transform_indices = @transform_1, window_bounds = array<i64: 128, 32>}, {pipeline_mode = #tpu.pipeline_mode<synchronous>, transform_indices = @transform_2, window_bounds = array<i64: 1, 32>}, {transform_indices = @transform_3, window_bounds = array<i64: 16, 32>}, {pipeline_mode = #tpu.pipeline_mode<synchronous>, transform_indices = @transform_4, window_bounds = array<i64: 1, 32>}, {pipeline_mode = #tpu.pipeline_mode<synchronous>, transform_indices = @transform_5, window_bounds = array<i64: 1, 32>}, {transform_indices = @transform_6, window_bounds = array<i64: 16, 32>}]} {
    %c0_i32 = arith.constant 0 : i32
    %0 = arith.cmpi eq, %arg1, %c0_i32 : i32
    %1 = arith.extui %0 : i1 to i32
    %c0_i32_0 = arith.constant 0 : i32
    %2 = arith.cmpi ne, %1, %c0_i32_0 : i32
    scf.if %2 {
      %cst_10 = arith.constant 0.000000e+00 : f32
      %12 = vector.broadcast %cst_10 : f32 to vector<16x32xf32>
      %c0_11 = arith.constant 0 : index
      %c0_12 = arith.constant 0 : index
      %13 = vector.load %arg9[%c0_11, %c0_12] : memref<16x32xf32, #tpu.memory_space<vmem>>, vector<16x32xf32>
      tpu.vector_store %arg9[%c0_11, %c0_12], %12 {strides = array<i32>} : memref<16x32xf32, #tpu.memory_space<vmem>>, vector<16x32xf32>,
    } else {
    }
    %c0 = arith.constant 0 : index
    %c0_1 = arith.constant 0 : index
    %3 = vector.load %arg9[%c0, %c0_1] : memref<16x32xf32, #tpu.memory_space<vmem>>, vector<16x32xf32>
    %c0_2 = arith.constant 0 : index
    %c0_3 = arith.constant 0 : index
    %4 = vector.load %arg2[%c0_2, %c0_3] : memref<16x128xf32, #tpu.memory_space<vmem>>, vector<16x128xf32>
    %c0_4 = arith.constant 0 : index
    %c0_5 = arith.constant 0 : index
    %5 = vector.load %arg3[%c0_4, %c0_5] : memref<128x32xf32, #tpu.memory_space<vmem>>, vector<128x32xf32>
    %cst = arith.constant dense<0.000000e+00> : vector<16x32xf32>
    %6 = tpu.matmul %4, %5, %cst {dimension_numbers = #tpu.dot_dimension_numbers<[1], [0], [0], [1], [0, 0, 1, 1], [], []>} : vector<16x128xf32>, vector<128x32xf32>, vector<16x32xf32> -> vector<16x32xf32>
    %7 = arith.addf %3, %6 : vector<16x32xf32>
    %c0_6 = arith.constant 0 : index
    %c0_7 = arith.constant 0 : index
    %8 = vector.load %arg9[%c0_6, %c0_7] : memref<16x32xf32, #tpu.memory_space<vmem>>, vector<16x32xf32>
    tpu.vector_store %arg9[%c0_6, %c0_7], %7 {strides = array<i32>} : memref<16x32xf32, #tpu.memory_space<vmem>>, vector<16x32xf32>,
    %c0_i32_8 = arith.constant 0 : i32
    %9 = arith.cmpi eq, %arg1, %c0_i32_8 : i32
    %10 = arith.extui %9 : i1 to i32
    %c0_i32_9 = arith.constant 0 : i32
    %11 = arith.cmpi ne, %10, %c0_i32_9 : i32
    scf.if %11 {
      %c0_10 = arith.constant 0 : index
      %c0_11 = arith.constant 0 : index
      %12 = vector.load %arg9[%c0_10, %c0_11] : memref<16x32xf32, #tpu.memory_space<vmem>>, vector<16x32xf32>
      %c0_12 = arith.constant 0 : index
      %c0_13 = arith.constant 0 : index
      %13 = vector.load %arg4[%c0_12, %c0_13] : memref<1x32xf32, #tpu.memory_space<vmem>>, vector<1x32xf32>
      %14 = vector.broadcast %13 : vector<1x32xf32> to vector<16x32xf32>
      %15 = arith.addf %12, %14 : vector<16x32xf32>
      %c0_14 = arith.constant 0 : index
      %c0_15 = arith.constant 0 : index
      %16 = vector.load %arg5[%c0_14, %c0_15] : memref<16x32xf32, #tpu.memory_space<vmem>>, vector<16x32xf32>
      %17 = arith.addf %15, %16 : vector<16x32xf32>
      %cst_16 = arith.constant dense<0.000000e+00> : vector<16xf32>
      %18 = vector.multi_reduction <add>, %17, %cst_16 [1] : vector<16x32xf32> to vector<16xf32>
      %19 = vector.shape_cast %18 : vector<16xf32> to vector<16x1xf32>
      %cst_17 = arith.constant 3.200000e+01 : f32
      %20 = vector.broadcast %cst_17 : f32 to vector<16x1xf32>
      %21 = arith.divf %19, %20 : vector<16x1xf32>
      %22 = vector.broadcast %21 : vector<16x1xf32> to vector<16x32xf32>
      %23 = arith.subf %17, %22 : vector<16x32xf32>
      %24 = vector.broadcast %21 : vector<16x1xf32> to vector<16x32xf32>
      %25 = arith.subf %17, %24 : vector<16x32xf32>
      %26 = arith.mulf %23, %25 : vector<16x32xf32>
      %cst_18 = arith.constant dense<0.000000e+00> : vector<16xf32>
      %27 = vector.multi_reduction <add>, %26, %cst_18 [1] : vector<16x32xf32> to vector<16xf32>
      %28 = vector.shape_cast %27 : vector<16xf32> to vector<16x1xf32>
      %cst_19 = arith.constant 3.200000e+01 : f32
      %29 = vector.broadcast %cst_19 : f32 to vector<16x1xf32>
      %30 = arith.divf %28, %29 : vector<16x1xf32>
      %31 = vector.broadcast %21 : vector<16x1xf32> to vector<16x32xf32>
      %32 = arith.subf %17, %31 : vector<16x32xf32>
      %cst_20 = arith.constant 9.99999996E-13 : f32
      %33 = vector.broadcast %cst_20 : f32 to vector<16x1xf32>
      %34 = arith.addf %30, %33 : vector<16x1xf32>
      %35 = math.rsqrt %34 : vector<16x1xf32>
      %36 = vector.broadcast %35 : vector<16x1xf32> to vector<16x32xf32>
      %37 = arith.mulf %32, %36 : vector<16x32xf32>
      %c0_21 = arith.constant 0 : index
      %c0_22 = arith.constant 0 : index
      %38 = vector.load %arg6[%c0_21, %c0_22] : memref<1x32xf32, #tpu.memory_space<vmem>>, vector<1x32xf32>
      %39 = vector.broadcast %38 : vector<1x32xf32> to vector<16x32xf32>
      %40 = arith.mulf %37, %39 : vector<16x32xf32>
      %c0_23 = arith.constant 0 : index
      %c0_24 = arith.constant 0 : index
      %41 = vector.load %arg7[%c0_23, %c0_24] : memref<1x32xf32, #tpu.memory_space<vmem>>, vector<1x32xf32>
      %42 = vector.broadcast %41 : vector<1x32xf32> to vector<16x32xf32>
      %43 = arith.addf %40, %42 : vector<16x32xf32>
      %c0_25 = arith.constant 0 : index
      %c0_26 = arith.constant 0 : index
      %44 = vector.load %arg8[%c0_25, %c0_26] : memref<16x32xf32, #tpu.memory_space<vmem>>, vector<16x32xf32>
      tpu.vector_store %arg8[%c0_25, %c0_26], %43 {strides = array<i32>} : memref<16x32xf32, #tpu.memory_space<vmem>>, vector<16x32xf32>,
    } else {
    }
    return
  }
  func.func @transform_0(%arg0: i32, %arg1: i32) -> (i32, i32) {
    %c0_i32 = arith.constant 0 : i32
    return %arg0, %arg1 : i32, i32
  }
  func.func @transform_1(%arg0: i32, %arg1: i32) -> (i32, i32) {
    %c0_i32 = arith.constant 0 : i32
    %c0_i32_0 = arith.constant 0 : i32
    return %arg1, %c0_i32 : i32, i32
  }
  func.func @transform_2(%arg0: i32, %arg1: i32) -> (i32, i32) {
    %c0_i32 = arith.constant 0 : i32
    %c0_i32_0 = arith.constant 0 : i32
    %c0_i32_1 = arith.constant 0 : i32
    return %c0_i32, %c0_i32_0 : i32, i32
  }
  func.func @transform_3(%arg0: i32, %arg1: i32) -> (i32, i32) {
    %c0_i32 = arith.constant 0 : i32
    %c0_i32_0 = arith.constant 0 : i32
    return %arg0, %c0_i32 : i32, i32
  }
  func.func @transform_4(%arg0: i32, %arg1: i32) -> (i32, i32) {
    %c0_i32 = arith.constant 0 : i32
    %c0_i32_0 = arith.constant 0 : i32
    %c0_i32_1 = arith.constant 0 : i32
    return %c0_i32, %c0_i32_0 : i32, i32
  }
  func.func @transform_5(%arg0: i32, %arg1: i32) -> (i32, i32) {
    %c0_i32 = arith.constant 0 : i32
    %c0_i32_0 = arith.constant 0 : i32
    %c0_i32_1 = arith.constant 0 : i32
    return %c0_i32, %c0_i32_0 : i32, i32
  }
  func.func @transform_6(%arg0: i32, %arg1: i32) -> (i32, i32) {
    %c0_i32 = arith.constant 0 : i32
    %c0_i32_0 = arith.constant 0 : i32
    return %arg0, %c0_i32 : i32, i32
  }
}

</mosaic_0001>

<bundles_post_ra>
// kernel: tpu_custom_call.1
= control target key start
LH: loop header
LB: loop body
LE: loop exit
PB: predicated region body
PF: predicated region fallthrough
CT: control target
= control target key end

     0   :  { %vm28_vm0 = vcmask 261120   ;;  %v298_v2 = vmov 0.0   ;;  %s419_s0 = inlined_call_operand.vmem [shape: f32[16,128], index: 0, kind: input, shape index: {}]   ;;  %s420_s1 = inlined_call_operand.vmem [shape: f32[128,32], index: 1, kind: input, shape index: {}]   ;;  %s421_s2 = inlined_call_operand.vmem [shape: f32[1,32], index: 2, kind: input, shape index: {}]   ;;  %s422_s3 = inlined_call_operand.vmem [shape: f32[16,32], index: 3, kind: input, shape index: {}]   ;;  %s423_s4 = inlined_call_operand.vmem [shape: f32[1,32], index: 4, kind: input, shape index: {}]   ;;  %s424_s5 = inlined_call_operand.vmem [shape: f32[1,32], index: 5, kind: input, shape index: {}]   ;;  %s425_s6 = inlined_call_operand.hbm [shape: f32[16,32], index: 6, kind: output, shape index: {}]  }
   0x1   :  { %v50_v0 = vld [vmem:[%s420_s1 + $0x78] sm:$0xff]  ;;  %v49_v1 = vld [vmem:[%s420_s1 + $0x70] sm:$0xff]  ;;  %30 = vst.msk [vmem:[#allocation2 + $0x8] sm:$0xff] %vm28_vm0, %v298_v2  ;;  %29 = vst.msk [vmem:[#allocation2] sm:$0xff] %vm28_vm0, %v298_v2 }
   0x2   :  { %233 = vmatprep.subr.mxu0 %v50_v0  ;;  %v48_v3 = vld [vmem:[%s420_s1 + $0x68] sm:$0xff]  ;;  %v47_v4 = vld [vmem:[%s420_s1 + $0x60] sm:$0xff]  ;;  %v46_v6 = vld [vmem:[%s420_s1 + $0x58] sm:$0xff] }
   0x3   :  { %234 = vmatpush3.msra.mxu0 %v50_v0  ;;  %v33_v5 = vld [vmem:[%s419_s0] sm:$0xff] }
   0x4   :  { %235 = vmatprep.subr.mxu0 %v49_v1  ;;  %265 = vmatprep.mubr.f32.mxu0 %v33_v5 }
   0x5   :  { %236 = vmatpush3.msra.mxu0 %v49_v1 }
   0x6   :  { %237 = vmatprep.subr.mxu0 %v48_v3 }
   0x7   :  { %238 = vmatpush3.msra.mxu0 %v48_v3 }
   0x8   :  { %11 = vsyncpa [#allocation4], 0  ;;  %239 = vmatprep.subr.mxu0 %v47_v4  ;;  %v45_v7 = vld [vmem:[%s420_s1 + $0x50] sm:$0xff]  ;;  %v44_v8 = vld [vmem:[%s420_s1 + $0x48] sm:$0xff]  ;;  %s299_s15 = smov [#allocation3]  }
   0x9   :  { %240 = vmatpush3.msra.mxu0 %v47_v4  ;;  %v43_v9 = vld [vmem:[%s420_s1 + $0x40] sm:$0xff]  ;;  %v42_v10 = vld [vmem:[%s420_s1 + $0x38] sm:$0xff]  ;;  %v41_v11 = vld [vmem:[%s420_s1 + $0x30] sm:$0xff]  ;;  %s201_s16 = sshll.u32 %s299_s15, 4  ;;  %s202_s16 = int_to_ptr.vmem [resolvable:$true] %s201_s16 }
   0xa   :  { %241 = vmatprep.subr.mxu0 %v46_v6  ;;  %v40_v12 = vld [vmem:[%s420_s1 + $0x28] sm:$0xff]  ;;  %v39_v13 = vld [vmem:[%s420_s1 + $0x20] sm:$0xff]  ;;  %v38_v14 = vld [vmem:[%s420_s1 + $0x18] sm:$0xff]  ;;  %s276_s17 = scalar_lea.vmem %s202_s16, 256  ;;  %p281_p1 = scmp.lt.s32.totalorder %s202_s16, %s202_s16 }
   0xb   :  { %242 = vmatpush3.msra.mxu0 %v46_v6  ;;  %v37_v15 = vld [vmem:[%s420_s1 + $0x10] sm:$0xff]  ;;  %v36_v16 = vld [vmem:[%s420_s1 + $0x8] sm:$0xff]  ;;  %v35_v17 = vld [vmem:[%s420_s1] sm:$0xff]  ;;  %p277_p0 = scmp.ne.s32.totalorder %s202_s16, %s276_s17  ;;  %p282_p2 = scmp.lt.s32.totalorder %s276_s17, %s276_s17 }
   0xc   :  { %243 = vmatprep.subr.mxu0 %v45_v7  ;;  %v34_v18 = vld [vmem:[%s419_s0 + $0x8] sm:$0xff]  ;;  %v31_v21 = vld [vmem:[#allocation2] sm:$0xff] }
   0xd   :  { %244 = vmatpush3.msra.mxu0 %v45_v7  ;;  %v32_v19 = vld [vmem:[#allocation2 + $0x8] sm:$0xff]  ;;  %v212_v25 = vld [vmem:[%s421_s2] ss:$0 sm:$0xff]  ;;  %p283_p3 = por %p282_p2, %p281_p1 }
   0xe   :  { %245 = vmatprep.subr.mxu0 %v44_v8  ;;  %v145_v28 = vld [vmem:[%s422_s3] sm:$0xff]  ;;  %v146_v31 = vld [vmem:[%s422_s3 + $0x8] sm:$0xff] }
   0xf   :  { %246 = vmatpush3.msra.mxu0 %v44_v8  ;;  %v213_v53 = vld [vmem:[%s423_s4] ss:$0 sm:$0xff]  ;;  %p284_p4 = pnand %p283_p3, %p277_p0 }
  0x10   :  { %247 = vmatprep.subr.mxu0 %v43_v9  ;;  %v214_v55 = vld [vmem:[%s424_s5] ss:$0 sm:$0xff] }
  0x11   :  { %248 = vmatpush3.msra.mxu0 %v43_v9 }
  0x12   :  { %249 = vmatprep.subr.mxu0 %v42_v10 }
  0x13   :  { %250 = vmatpush3.msra.mxu0 %v42_v10 }
  0x14   :  { %251 = vmatprep.subr.mxu0 %v41_v11 }
  0x15   :  { %252 = vmatpush3.msra.mxu0 %v41_v11 }
  0x16   :  { %253 = vmatprep.subr.mxu0 %v40_v12 }
  0x17   :  { %254 = vmatpush3.msra.mxu0 %v40_v12 }
  0x18   :  { %255 = vmatprep.subr.mxu0 %v39_v13 }
  0x19   :  { %256 = vmatpush3.msra.mxu0 %v39_v13 }
  0x1a   :  { %257 = vmatprep.subr.mxu0 %v38_v14 }
  0x1b   :  { %258 = vmatpush3.msra.mxu0 %v38_v14 }
  0x1c   :  { %259 = vmatprep.subr.mxu0 %v37_v15 }
  0x1d   :  { %260 = vmatpush3.msra.mxu0 %v37_v15 }
  0x1e   :  { %261 = vmatprep.subr.mxu0 %v36_v16 }
  0x1f   :  { %262 = vmatpush3.msra.mxu0 %v36_v16 }
  0x20   :  { %263 = vmatprep.subr.mxu0 %v35_v17 }
  0x21   :  { %264 = vmatpush3.msra.mxu0 %v35_v17 }
  0x22   :  { %266 = vmatmul.mubr.f32.vlgmr.msra.gmra.mxu0 %v34_v18 }
  0xe2   :  { %v267_v20 = vpop.f32.mrf.mxu0 }
  0xe3   :  { %v127_v22 = vadd.f32 %v267_v20, %v32_v19 }
  0xe4   :  { %v117_v23 = vpop.f32.mrf.mxu0 }
  0xe5   :  { %130 = vst.msk [vmem:[#allocation2 + $0x8] sm:$0xff] %vm28_vm0, %v127_v22  ;;  %v126_v24 = vadd.f32 %v117_v23, %v31_v21 }
  0xe7   :  { %129 = vst.msk [vmem:[#allocation2] sm:$0xff] %vm28_vm0, %v126_v24 }
  0xec   :  { %v135_v26 = vld [vmem:[#allocation2 + $0x8] sm:$0xff] }
  0xed   :  { %v144_v30 = vadd.f32 %v212_v25, %v135_v26 }
  0xee   :  { %v134_v27 = vld [vmem:[#allocation2] sm:$0xff] }
  0xef   :  { %v143_v29 = vadd.f32 %v212_v25, %v134_v27  ;;  %v148_v34 = vadd.f32 %v146_v31, %v144_v30 }
  0xf1   :  { %v147_v32 = vadd.f32 %v145_v28, %v143_v29  ;;  %v152_v35 = vsel %vm28_vm0, %v148_v34, 0.0 }
  0xf3   :  { %v149_v33 = vsel %vm28_vm0, %v147_v32, 0.0 }
  0xf4   :  { %150 = vadd.xlane.f32.xlu0 %v149_v33 }
  0xf8   :  { %153 = vadd.xlane.f32.xlu0 %v152_v35 }
 0x17d   :  { %v151_v36 = vpop.xlane.xlu0 %150 }
 0x17e   :  { %v156_v37 = vmul.f32 0.03125, %v151_v36 }
 0x180   :  { %v158_v38 = vsub.f32 %v147_v32, %v156_v37 }
 0x181   :  { %v154_v39 = vpop.xlane.xlu0 %153 }
 0x182   :  { %v157_v40 = vmul.f32 0.03125, %v154_v39  ;;  %v160_v41 = vmul.f32 %v158_v38, %v158_v38 }
 0x184   :  { %v159_v42 = vsub.f32 %v148_v34, %v157_v40  ;;  %v162_v43 = vsel %vm28_vm0, %v160_v41, 0.0 }
 0x185   :  { %163 = vadd.xlane.f32.xlu1 %v162_v43 }
 0x186   :  { %v161_v44 = vmul.f32 %v159_v42, %v159_v42 }
 0x188   :  { %v165_v45 = vsel %vm28_vm0, %v161_v44, 0.0 }
 0x189   :  { %166 = vadd.xlane.f32.xlu1 %v165_v45 }
 0x20e   :  { %v164_v46 = vpop.xlane.xlu1 %163 }
 0x20f   :  { %v168_v47 = vmul.f32 0.03125, %v164_v46 }
 0x211   :  { %v170_v48 = vadd.f32 1e-12, %v168_v47 }
 0x212   :  { %v167_v49 = vpop.xlane.xlu1 %166 }
 0x213   :  { %272 = vrsqrt.f32 %v170_v48  ;;  %v169_v50 = vmul.f32 0.03125, %v167_v49 }
 0x215   :  { %v171_v51 = vadd.f32 1e-12, %v169_v50 }
 0x217   :  { %274 = vrsqrt.f32 %v171_v51 }
 0x220   :  { %v273_v52 = vpop.eup %272 }
 0x221   :  { %v174_v54 = vmul.f32 %v273_v52, %v158_v38 }
 0x223   :  { %v183_v56 = vmul.f32 %v213_v53, %v174_v54 }
 0x224   :  { %v275_v57 = vpop.eup %274 }
 0x225   :  { %v175_v58 = vmul.f32 %v275_v57, %v159_v42  ;;  %v192_v59 = vadd.f32 %v214_v55, %v183_v56 }
 0x227   :  { %v184_v60 = vmul.f32 %v213_v53, %v175_v58  ;;  %194 = vst.msk [vmem:[#allocation3] sm:$0xff] %vm28_vm0, %v192_v59 }
 0x229   :  { %v193_v61 = vadd.f32 %v214_v55, %v184_v60 }
 0x22b   :  { %195 = vst.msk [vmem:[#allocation3 + $0x8] sm:$0xff] %vm28_vm0, %v193_v61 }
 0x22c   :  { %287 = shalt.err (!%p284_p4)
}
 0x22d   :  { %s300_s4 = smov 128   ;;  %s301_s5 = smov 8  }
 0x22e   :  { %207 = dma.vmem_to_hbm [thread:$0]  %s202_s16, 256, %s425_s6, [#allocation4], %s300_s4, %s300_s4, %s301_s5  }
 0x22f   :  { %296 = dma.done.wait [#allocation4], 256  }
 0x230   :  { %297 = vsyncadd [#allocation4], 4294967040 }
 0x231   :  { %211 = vsyncpa [#allocation4], 1 }

</bundles_post_ra>
